<compile_context>
chip_gen: v7x
topology: tpu7x:2x2x1
jax: 0.10.0
libtpu: 0.0.40
codegen_flags: <defaults>
</compile_context>

<pallas_src>
import functools

import numpy as np
import jax
import jax.numpy as jnp
from jax import lax
from jax.experimental import pallas as pl
from jax.experimental.pallas import tpu as pltpu

# Same convention as mmcv's CornerPool.cummax_dim_flip
_CUMMAX_DIM_FLIP = {
    'bottom': (2, False),
    'left': (3, True),
    'right': (3, False),
    'top': (2, True),
}

_LANE = 128
_SUBLANE = 8


@functools.lru_cache(maxsize=None)
def _device_kind() -> str:
    try:
        return jax.devices()[0].device_kind.lower()
    except Exception:
        return ""


@functools.lru_cache(maxsize=None)
def _tpu_memory_config():
    """(target_block_bytes, vmem_limit_bytes), generation-aware.

    v5e / v6e have 128 MiB physical VMEM per TensorCore -> 4 MiB blocks and a
    64 MiB scoped limit.  v7x (64 MiB VMEM) and unknown chips stay at 2 MiB /
    32 MiB: double-buffered in+out blocks stay well inside the scoped budget
    while still being past the ~1 MiB knee of the HBM pipeline.
    """
    kind = _device_kind()
    if any(t in kind for t in ("v5", "v6")):
        return 4 * 1024 * 1024, 64 * 1024 * 1024
    return 2 * 1024 * 1024, 32 * 1024 * 1024


@functools.lru_cache(maxsize=None)
def _upcast_subword_floats() -> bool:
    """Upcast bf16/fp16 to f32 inside the kernel only on pre-v6 chips.

    max/compare/select are exact in bf16, so results are identical either way;
    v6e/v7x handle packed bf16 natively, where an upcast would only double
    vreg / VMEM pressure.
    """
    kind = _device_kind()
    return any(t in kind for t in ("v2", "v3", "v4", "v5"))


@functools.lru_cache(maxsize=None)
def _roll_matches_jnp_roll() -> bool:
    """Probe pltpu.roll's rotation direction once.

    Returns True iff pltpu.roll(x, s, axis) == jnp.roll(x, s, axis), i.e. a
    positive shift moves elements toward higher indices.  The scan below is
    written to be correct under either convention.
    """
    def probe(x_ref, o_ref):
        o_ref[...] = pltpu.roll(x_ref[...], 1, 1)

    x = lax.broadcasted_iota(jnp.int32, (_SUBLANE, _LANE), 1)
    out = pl.pallas_call(
        probe, out_shape=jax.ShapeDtypeStruct((_SUBLANE, _LANE), jnp.int32)
    )(x)
    return int(out[0, 0]) == _LANE - 1


def _make_cummax_kernel(*, lane_len, extent, stride, reverse, roll_fwd,
                        block_rows, upcast):
    """Segmented cumulative max along the lane axis of a (block_rows, lane_len) block.

    Each lane belongs to a scan segment of `extent` elements spaced `stride`
    lanes apart (stride=W, extent=H for the H-scan on an (H*W)-flattened image;
    stride=1, extent=W for the W-scan).  pos_ref holds each lane's 0-based
    position within its segment; lanes past H*W (lane padding) never feed a
    real lane, so their values are irrelevant.
    """
    # Static log-step schedule: logical shift stride*2^k, translated to a roll
    # amount according to the probed roll convention.
    steps = []
    p = 1
    while p < extent:
        s = stride * p
        if reverse:
            roll_shift = (lane_len - s) if roll_fwd else s
        else:
            roll_shift = s if roll_fwd else (lane_len - s)
        steps.append((p, roll_shift))
        p *= 2

    chunk = _SUBLANE if block_rows % _SUBLANE == 0 else block_rows
    n_chunks = block_rows // chunk

    def kernel(pos_ref, x_ref, o_ref):
        # (1, lane_len) position map and keep-masks; jnp.where broadcasts them
        # along sublanes (a sublane-broadcast select is essentially free and
        # keeps the masks 8x smaller than per-chunk masks).
        pos = pos_ref[...]                                    # (1, L) int32
        keeps = []
        for pk, _ in steps:
            if reverse:
                keeps.append(pos >= (extent - pk))            # keep original
            else:
                keeps.append(pos < pk)

        orig_dtype = x_ref.dtype

        def scan_chunk(r0):
            y = x_ref[pl.ds(r0, chunk), :]
            if upcast:
                y = y.astype(jnp.float32)
            for (_, roll_shift), keep in zip(steps, keeps):
                shifted = pltpu.roll(y, roll_shift, 1)
                y = jnp.where(keep, y, jnp.maximum(y, shifted))
            o_ref[pl.ds(r0, chunk), :] = y.astype(orig_dtype)

        if n_chunks == 1:
            scan_chunk(0)
        else:
            # fori_loop (not an unrolled Python for) bounds the live set to a
            # single (chunk, lane_len) tile regardless of block_rows.
            def body(i, carry):
                r0 = pl.multiple_of(i * chunk, chunk)
                scan_chunk(r0)
                return carry
            lax.fori_loop(0, n_chunks, body, 0)

    return kernel


def _pick_block_rows(G, row_bytes, target_bytes, max_rows=2048):
    """Image slabs (of N*C) per block.

    Big enough to amortize per-step overhead and produce large, lane-dense
    DMAs; a multiple of 8 sublanes when tiling; and split into >= 2 grid
    blocks whenever an aligned split exists so the ("parallel",) grid axis can
    be sharded across both TensorCores on v7x.
    """
    b = max(1, int(target_bytes) // max(int(row_bytes), 1))
    b = min(b, G, max_rows)
    if 2 * b > G and G >= 2 * _SUBLANE:
        b = ((G // 2) // _SUBLANE) * _SUBLANE
    if b < G:
        if b >= _SUBLANE:
            b = (b // _SUBLANE) * _SUBLANE
        else:
            b = min(_SUBLANE, G)
    return max(b, 1)


@functools.partial(
    jax.jit,
    static_argnames=("mode", "roll_fwd", "target_block_bytes",
                     "vmem_limit_bytes", "upcast_subword"))
def _corner_pool_impl(x, mode, roll_fwd, target_block_bytes,
                      vmem_limit_bytes, upcast_subword):
    dim, flip = _CUMMAX_DIM_FLIP[mode]
    N, C, H, W = x.shape
    G = N * C
    L = H * W
    L_pad = ((L + _LANE - 1) // _LANE) * _LANE
    itemsize = jnp.dtype(x.dtype).itemsize

    # Free reshape: (N,C,H,W) -> (G, H*W); lane-dense last dim even for W<128.
    x2 = x.reshape(G, L)
    if L_pad != L:
        # Extra HBM pass only when H*W is not a multiple of 128 (kept for
        # lowering safety of pltpu.roll on unaligned lane widths).
        x2 = jnp.pad(x2, ((0, 0), (0, L_pad - L)))

    lane = np.arange(L_pad)
    if dim == 2:      # scan over H (top / bottom): segments = columns, stride W
        stride, extent = W, H
        pos_np = np.where(lane < L, lane // W, extent)
    else:             # scan over W (left / right): segments = image rows
        stride, extent = 1, W
        pos_np = np.where(lane < L, lane % W, extent)
    pos = jnp.asarray(pos_np[None, :].astype(np.int32))

    B = _pick_block_rows(G, L_pad * itemsize, target_block_bytes)
    grid = (pl.cdiv(G, B),)
    num_steps = (extent - 1).bit_length()   # ceil(log2(extent)), 0 if extent==1

    upcast = (upcast_subword
              and jnp.issubdtype(x.dtype, jnp.floating)
              and itemsize < 4)

    kernel = _make_cummax_kernel(
        lane_len=L_pad, extent=extent, stride=stride,
        reverse=flip, roll_fwd=roll_fwd, block_rows=B, upcast=upcast)

    out2 = pl.pallas_call(
        kernel,
        out_shape=jax.ShapeDtypeStruct((G, L_pad), x.dtype),
        grid_spec=pltpu.PrefetchScalarGridSpec(
            num_scalar_prefetch=0,
            grid=grid,
            in_specs=[
                pl.BlockSpec((1, L_pad), lambda g: (0, 0)),   # pos (broadcast)
                pl.BlockSpec((B, L_pad), lambda g: (g, 0)),   # x slabs
            ],
            out_specs=pl.BlockSpec((B, L_pad), lambda g: (g, 0)),
        ),
        compiler_params=pltpu.CompilerParams(
            dimension_semantics=("parallel",),
            vmem_limit_bytes=vmem_limit_bytes,
        ),
        cost_estimate=pl.CostEstimate(
            flops=2 * G * L_pad * max(num_steps, 1),
            transcendentals=0,
            bytes_accessed=2 * G * L_pad * itemsize + L_pad * 4,
        ),
    )(pos, x2)

    if L_pad != L:
        out2 = out2[:, :L]
    return out2.reshape(N, C, H, W)


def corner_pool(x, mode: str):
    """CornerPool forward. x: (N, C, H, W), NCHW layout (same as PyTorch)."""
    assert mode in _CUMMAX_DIM_FLIP
    target_block_bytes, vmem_limit_bytes = _tpu_memory_config()
    return _corner_pool_impl(
        x, mode, _roll_matches_jnp_roll(),
        target_block_bytes, vmem_limit_bytes, _upcast_subword_floats())


def _reference(x, mode):
    dim, flip = _CUMMAX_DIM_FLIP[mode]
    return lax.cummax(x, axis=dim, reverse=flip)


if __name__ == "__main__":
    key = jax.random.PRNGKey(0)
    # Shapes exercise: the main path, G not a multiple of the chosen block B
    # (partial last block), and H*W not a multiple of 128 (pad/crop path).
    shapes = [(2, 4, 16, 16), (2, 9, 16, 16), (2, 8, 10, 12)]

    ok = True
    for shape in shapes:
        key, sub = jax.random.split(key)
        x = jax.random.normal(sub, shape, dtype=jnp.float32)
        for mode in ("top", "bottom", "left", "right"):
            out = jax.block_until_ready(corner_pool(x, mode))
            ref = _reference(x, mode)
            if out.shape != ref.shape or out.dtype != ref.dtype:
                ok = False
            elif not bool(jnp.allclose(out, ref, atol=1e-6, rtol=1e-6)):
                ok = False

    print("KERNEL_OK" if ok else "KERNEL_MISMATCH")
</pallas_src>

<mosaic_0001>
module attributes {stable_mosaic.version = 11 : i64} {
  func.func @probe(%arg0: memref<8x128xi32, #tpu.memory_space<vmem>>, %arg1: memref<8x128xi32, #tpu.memory_space<vmem>>) attributes {dimension_semantics = [], scalar_prefetch = 0 : i64, scratch_operands = 0 : i64, tpu.core_type = #tpu.core_type<tc>} {
    %c0 = arith.constant 0 : index
    %c0_0 = arith.constant 0 : index
    %0 = vector.load %arg0[%c0, %c0_0] : memref<8x128xi32, #tpu.memory_space<vmem>>, vector<8x128xi32>
    %c1_i32 = arith.constant 1 : i32
    %1 = tpu.dynamic_rotate %0 by %c1_i32 dim 1 : vector<8x128xi32>, i32 -> vector<8x128xi32>
    %c0_1 = arith.constant 0 : index
    %c0_2 = arith.constant 0 : index
    %2 = vector.load %arg1[%c0_1, %c0_2] : memref<8x128xi32, #tpu.memory_space<vmem>>, vector<8x128xi32>
    tpu.vector_store %arg1[%c0_1, %c0_2], %1 {strides = array<i32>} : memref<8x128xi32, #tpu.memory_space<vmem>>, vector<8x128xi32>,
    return
  }
}

</mosaic_0001>

<bundles_post_ra>
// kernel: tpu_custom_call.1
= control target key start
LH: loop header
LB: loop body
LE: loop exit
PB: predicated region body
PF: predicated region fallthrough
CT: control target
= control target key end

     0   :  { %6 = vsyncpa [#allocation3], 0  ;;  %s128_s0 = inlined_call_operand.hbm [shape: s32[8,128], index: 0, kind: input, shape index: {}]   ;;  %s129_s1 = inlined_call_operand.hbm [shape: s32[8,128], index: 1, kind: output, shape index: {}]  }
   0x1   :  { %7 = vsyncpa [#allocation4], 0  ;;  %s91_s6 = smov [#allocation2]   ;;  %s43_s10 = scalar_lea.hbm %s128_s0, 128 }
   0x2   :  { %s14_s7 = sshll.u32 %s91_s6, 4  ;;  %p44_p0 = scmp.ne.s32.totalorder %s128_s0, %s43_s10  ;;  %s15_s7 = int_to_ptr.vmem [resolvable:$true] %s14_s7 }
   0x3   :  { %p47_p1 = scmp.lt.u32.totalorder %s43_s10, %s128_s0 }
   0x5   :  { %p49_p2 = pnand %p47_p1, %p44_p0 }
   0x7   :  { %52 = shalt.err (!%p49_p2)
}
   0x8   :  { %s53_s15 = scalar_lea.vmem %s15_s7, 128  ;;  %p58_p4 = scmp.lt.s32.totalorder %s15_s7, %s15_s7 }
   0x9   :  { %p54_p3 = scmp.ne.s32.totalorder %s15_s7, %s53_s15  ;;  %p59_p5 = scmp.lt.s32.totalorder %s53_s15, %s53_s15 }
   0xb   :  { %p60_p6 = por %p59_p5, %p58_p4 }
   0xd   :  { %p61_p7 = pnand %p60_p6, %p54_p3 }
   0xf   :  { %64 = shalt.err (!%p61_p7)
}
  0x10   :  { %17 = dma.hbm_to_vmem [thread:$0]  %s128_s0, 128, %s15_s7, [#allocation3]  }
  0x11   :  { %87 = dma.done.wait [#allocation3], 128  }
  0x12   :  { %88 = vsyncadd [#allocation3], 4294967168  ;;  %v21_v0 = vld [vmem:[#allocation2] sm:$0xff]  ;;  %s92_s18 = smov 1   ;;  %s93_s19 = smov [#allocation5]  }
  0x13   :  { %22 = vrot.lane.b32.xlu0 %v21_v0, %s92_s18  ;;  %s31_s20 = sshll.u32 %s93_s19, 4  ;;  %s32_s20 = int_to_ptr.vmem [resolvable:$true] %s31_s20 }
  0x14   :  { %s65_s21 = scalar_lea.vmem %s32_s20, 128  ;;  %p70_p9 = scmp.lt.s32.totalorder %s32_s20, %s32_s20 }
  0x15   :  { %p66_p8 = scmp.ne.s32.totalorder %s32_s20, %s65_s21  ;;  %p71_p10 = scmp.lt.s32.totalorder %s65_s21, %s65_s21 }
  0x17   :  { %p72_p11 = por %p71_p10, %p70_p9 }
  0x19   :  { %p73_p12 = pnand %p72_p11, %p66_p8 }
  0x85   :  { %v23_v1 = vpop.permute.xlu0 %22 }
  0x86   :  { %24 = vst [vmem:[#allocation5] sm:$0xff] %v23_v1 }
  0x87   :  { %76 = shalt.err (!%p73_p12)
}
  0x88   :  { %s77_s0 = scalar_lea.hbm %s129_s1, 128 }
  0x89   :  { %p78_p13 = scmp.ne.s32.totalorder %s129_s1, %s77_s0  ;;  %p81_p0 = scmp.lt.u32.totalorder %s77_s0, %s129_s1 }
  0x8b   :  { %p83_p1 = pnand %p81_p0, %p78_p13 }
  0x8d   :  { %86 = shalt.err (!%p83_p1)
}
  0x8e   :  { %34 = dma.vmem_to_hbm [thread:$0]  %s32_s20, 128, %s129_s1, [#allocation4]  }
  0x8f   :  { %89 = dma.done.wait [#allocation4], 128  }
  0x90   :  { %90 = vsyncadd [#allocation4], 4294967168 }
  0x91   :  { %38 = vsyncpa [#allocation3], 1 }
  0x92   :  { %39 = vsyncpa [#allocation4], 1 }

</bundles_post_ra>
